<compile_context>
chip_gen: v7x
topology: tpu7x:2x2x1
jax: 0.10.0
libtpu: 0.0.40
codegen_flags: <defaults>
</compile_context>

<pallas_src>
import functools

import jax
import jax.numpy as jnp
from jax.experimental import pallas as pl
from jax.experimental.pallas import tpu as pltpu


def _round_up(x, m):
    return (x + m - 1) // m * m


# ----------------------------------------------------------------------------
# Fused TimeDistributed-Linear kernel: (tm, D_in_p) @ (D_in_p, D_out_p) + bias
# (+ optional tanh epilogue), f32 accumulation on the MXU.
# ----------------------------------------------------------------------------
def _tdd_kernel(x_ref, w_ref, b_ref, o_ref, *, activation):
    acc = jnp.dot(x_ref[...], w_ref[...], preferred_element_type=jnp.float32)
    acc = acc + b_ref[...].astype(jnp.float32)
    if activation == "tanh":
        acc = jnp.tanh(acc)
    o_ref[...] = acc.astype(o_ref.dtype)


def time_distributed_dense(x, weight, bias, *, activation=None, tm_max=512):
    """TimeDistributed(nn.Linear) forward.

    x: (..., D_in); weight: (D_out, D_in) [PyTorch layout]; bias: (D_out,).
    activation: None or "tanh" (fused into the kernel epilogue).
    """
    orig_shape = x.shape
    d_in = orig_shape[-1]
    d_out = weight.shape[0]

    x2 = x.reshape(-1, d_in)
    rows = x2.shape[0]
    dtype = x2.dtype
    itemsize = jnp.dtype(dtype).itemsize

    sub = 16 if dtype == jnp.bfloat16 else 8   # sublane packing (bf16 packs 2 rows)
    lane = 128

    # Lane-dense padding of both feature dims (zero pad -> exact math).
    d_in_p = _round_up(d_in, lane)
    d_out_p = _round_up(d_out, lane)

    # Row tile: one grid step when the problem is small; otherwise cap by a
    # conservative VMEM budget (sized for v7x's 64 MiB VMEM / 32 MiB scoped).
    vmem_budget = 24 * 1024 * 1024
    fixed = (d_in_p * d_out_p + d_out_p) * itemsize      # single-buffered weight + bias
    per_row = 2 * (d_in_p + d_out_p) * itemsize          # double-buffered x and out tiles
    tm_cap = max(sub, (vmem_budget - fixed) // max(per_row, 1))
    tm = min(tm_max, _round_up(rows, sub), tm_cap)
    tm = max(sub, (tm // sub) * sub)
    rows_p = _round_up(rows, tm)

    # Pad operands.  (weight.T is cheap here; pre-transpose once outside the hot
    # path / under jit for repeated production use.)
    x_p = jnp.pad(x2, ((0, rows_p - rows), (0, d_in_p - d_in)))
    w_p = jnp.pad(weight.T, ((0, d_in_p - d_in), (0, d_out_p - d_out)))
    b_p = jnp.pad(bias.reshape(1, d_out), ((0, 0), (0, d_out_p - d_out)))

    grid_m = rows_p // tm
    # Weight/bias blocks never change across the grid: single-buffer them when
    # the grid actually iterates (frees VMEM headroom for a larger row tile).
    const_mode = pl.Buffered(1) if grid_m > 1 else None

    cost = pl.CostEstimate(
        flops=2 * rows_p * d_in_p * d_out_p,
        transcendentals=rows_p * d_out_p if activation == "tanh" else 0,
        bytes_accessed=itemsize * (rows_p * d_in_p + d_in_p * d_out_p
                                   + d_out_p + rows_p * d_out_p),
    )

    # TODO(synk): for production-scale D_in/D_out (multi-thousand) add K/N grid
    # axes with an f32 VMEM accumulator (pl.when init/finalize) instead of one
    # full-weight block.
    y_p = pl.pallas_call(
        functools.partial(_tdd_kernel, activation=activation),
        out_shape=jax.ShapeDtypeStruct((rows_p, d_out_p), dtype),
        grid_spec=pltpu.PrefetchScalarGridSpec(
            num_scalar_prefetch=0,
            grid=(grid_m,),
            in_specs=[
                pl.BlockSpec((tm, d_in_p), lambda i: (i, 0)),
                pl.BlockSpec((d_in_p, d_out_p), lambda i: (0, 0),
                             pipeline_mode=const_mode),
                pl.BlockSpec((1, d_out_p), lambda i: (0, 0),
                             pipeline_mode=const_mode),
            ],
            out_specs=pl.BlockSpec((tm, d_out_p), lambda i: (i, 0)),
        ),
        compiler_params=pltpu.CompilerParams(
            dimension_semantics=("parallel",)),
        cost_estimate=cost,
    )(x_p, w_p, b_p)

    y2 = y_p[:rows, :d_out]

    if len(orig_shape) <= 2:
        return y2.reshape(orig_shape[:-1] + (d_out,))
    # TimeDistributed batch_first=False path: y.view(-1, x.size(1), d_out)
    return y2.reshape(-1, orig_shape[1], d_out)


# ----------------------------------------------------------------------------
# Head modules built on the Pallas dense kernel (dropout = identity, eval mode).
# ----------------------------------------------------------------------------
def word_attention(x, token_mask, p):
    """x: (B, Ns, Nt, D); token_mask: (B, Ns, Nt) -> (B, Ns, D), (B, Ns)."""
    B, Ns, Nt, D = x.shape
    flat = x.reshape(-1, D)
    proj = time_distributed_dense(flat, p["wa_proj_w"], p["wa_proj_b"],
                                  activation="tanh")
    raw = time_distributed_dense(proj, p["wa_score_w"], p["wa_score_b"])
    raw = raw.reshape(B, Ns, Nt)
    masked = jnp.where(token_mask.astype(bool), raw, -jnp.inf)
    att = jax.nn.softmax(masked, axis=-1)
    att = jnp.where(jnp.isnan(att), jnp.zeros_like(att), att)
    out = jnp.einsum("bst,bstd->bsd", att, x)
    return out, token_mask[:, :, 0]


def dynamic_sentence_attention(sentence_reps, sentence_mask, att_scores,
                               valid_scores):
    if sentence_reps.shape[0] > 0:
        m = jnp.logical_and(sentence_mask.astype(bool), valid_scores.astype(bool))
        scores = jnp.where(m, att_scores, jnp.full_like(att_scores, -10000.0))
        att = jax.nn.softmax(scores, axis=-1)
        return jnp.einsum("bs,bsd->bd", att, sentence_reps)
    return sentence_reps[:, 0, :]


def classification_head(x, p):
    h = time_distributed_dense(x, p["head_dense_w"], p["head_dense_b"],
                               activation="tanh")
    return time_distributed_dense(h, p["head_out_w"], p["head_out_b"])


def stance_paragraph_head_forward(bert_tokens, token_mask, params):
    """Post-BERT forward of StanceParagraphClassifier (stance_label=None)."""
    sentence_reps, sentence_mask = word_attention(bert_tokens, token_mask, params)
    paragraph_rep = dynamic_sentence_attention(
        sentence_reps, sentence_mask, sentence_mask.astype(jnp.float32),
        sentence_mask)
    stance_logits = classification_head(paragraph_rep, params)
    stance_pred = jnp.argmax(stance_logits, axis=-1)
    return stance_logits, stance_pred


# ----------------------------------------------------------------------------
# Pure-JAX reference (no Pallas) for correctness checking.
# ----------------------------------------------------------------------------
def _linear_ref(x, w, b):
    return x @ w.T + b


def reference_forward(bert_tokens, token_mask, p):
    B, Ns, Nt, D = bert_tokens.shape
    flat = bert_tokens.reshape(-1, D)
    proj = jnp.tanh(_linear_ref(flat, p["wa_proj_w"], p["wa_proj_b"]))
    raw = _linear_ref(proj, p["wa_score_w"], p["wa_score_b"]).reshape(B, Ns, Nt)
    masked = jnp.where(token_mask.astype(bool), raw, -jnp.inf)
    att = jax.nn.softmax(masked, axis=-1)
    att = jnp.where(jnp.isnan(att), jnp.zeros_like(att), att)
    sent = jnp.einsum("bst,bstd->bsd", att, bert_tokens)
    smask = token_mask[:, :, 0].astype(bool)
    scores = jnp.where(smask, smask.astype(jnp.float32), -10000.0)
    satt = jax.nn.softmax(scores, axis=-1)
    para = jnp.einsum("bs,bsd->bd", satt, sent)
    h = jnp.tanh(_linear_ref(para, p["head_dense_w"], p["head_dense_b"]))
    return _linear_ref(h, p["head_out_w"], p["head_out_b"])


if __name__ == "__main__":
    B, N_SENT, N_TOK, BERT_DIM, N_LABELS = 2, 4, 8, 128, 3

    key = jax.random.PRNGKey(0)
    ks = jax.random.split(key, 13)

    def linear_init(kw, kb, d_out, d_in):
        bound = 1.0 / (d_in ** 0.5)
        w = jax.random.uniform(kw, (d_out, d_in), minval=-bound, maxval=bound,
                               dtype=jnp.float32)
        b = jax.random.uniform(kb, (d_out,), minval=-bound, maxval=bound,
                               dtype=jnp.float32)
        return w, b

    params = {}
    params["wa_proj_w"], params["wa_proj_b"] = linear_init(ks[0], ks[1], BERT_DIM, BERT_DIM)
    params["wa_score_w"], params["wa_score_b"] = linear_init(ks[2], ks[3], 1, BERT_DIM)
    params["head_dense_w"], params["head_dense_b"] = linear_init(ks[4], ks[5], BERT_DIM, BERT_DIM)
    params["head_out_w"], params["head_out_b"] = linear_init(ks[6], ks[7], N_LABELS, BERT_DIM)

    # Precomputed BERT token reps (stand-in for bert_out[batch_idx, idx_by_batch, :]).
    bert_tokens = jax.random.normal(ks[8], (B, N_SENT, N_TOK, BERT_DIM),
                                    dtype=jnp.float32)
    token_mask = (jax.random.uniform(ks[9], (B, N_SENT, N_TOK)) > 0.2
                  ).astype(jnp.float32)
    token_mask = token_mask.at[:, :, 0].set(1.0)

    # --- direct TimeDistributedDense check: 3-D input, ragged rows, tiny d_out ---
    x3 = jax.random.normal(ks[10], (2, 5, BERT_DIM), dtype=jnp.float32)
    w3, b3 = linear_init(ks[11], ks[12], 3, BERT_DIM)
    y3 = jax.block_until_ready(time_distributed_dense(x3, w3, b3))
    y3_ref = (x3.reshape(-1, BERT_DIM) @ w3.T + b3).reshape(2, 5, 3)
    assert y3.shape == (2, 5, 3)
    assert jnp.allclose(y3, y3_ref, atol=1e-4, rtol=1e-4)

    # --- full post-BERT head forward ---
    logits, pred = stance_paragraph_head_forward(bert_tokens, token_mask, params)
    logits = jax.block_until_ready(logits)
    pred = jax.block_until_ready(pred)

    logits_ref = reference_forward(bert_tokens, token_mask, params)
    assert logits.shape == (B, N_LABELS)
    assert pred.shape == (B,)
    assert jnp.allclose(logits, logits_ref, atol=1e-4, rtol=1e-4)

    print("KERNEL_OK")
</pallas_src>

<mosaic_0001>
module attributes {stable_mosaic.version = 11 : i64} {
  func.func @_tdd_kernel(%arg0: i32, %arg1: memref<16x128xf32, #tpu.memory_space<vmem>>, %arg2: memref<128x128xf32, #tpu.memory_space<vmem>>, %arg3: memref<1x128xf32, #tpu.memory_space<vmem>>, %arg4: memref<16x128xf32, #tpu.memory_space<vmem>>) attributes {dimension_semantics = [#tpu.dimension_semantics<parallel>], iteration_bounds = array<i64: 1>, scalar_prefetch = 0 : i64, scratch_operands = 0 : i64, tpu.core_type = #tpu.core_type<tc>, window_params = [{transform_indices = @transform_0, window_bounds = array<i64: 16, 128>}, {pipeline_mode = #tpu.pipeline_mode<synchronous>, transform_indices = @transform_1, window_bounds = array<i64: 128, 128>}, {pipeline_mode = #tpu.pipeline_mode<synchronous>, transform_indices = @transform_2, window_bounds = array<i64: 1, 128>}, {transform_indices = @transform_3, window_bounds = array<i64: 16, 128>}]} {
    %c0 = arith.constant 0 : index
    %c0_0 = arith.constant 0 : index
    %0 = vector.load %arg1[%c0, %c0_0] : memref<16x128xf32, #tpu.memory_space<vmem>>, vector<16x128xf32>
    %c0_1 = arith.constant 0 : index
    %c0_2 = arith.constant 0 : index
    %1 = vector.load %arg2[%c0_1, %c0_2] : memref<128x128xf32, #tpu.memory_space<vmem>>, vector<128x128xf32>
    %cst = arith.constant dense<0.000000e+00> : vector<16x128xf32>
    %2 = tpu.matmul %0, %1, %cst {dimension_numbers = #tpu.dot_dimension_numbers<[1], [0], [0], [1], [0, 0, 1, 1], [], []>} : vector<16x128xf32>, vector<128x128xf32>, vector<16x128xf32> -> vector<16x128xf32>
    %c0_3 = arith.constant 0 : index
    %c0_4 = arith.constant 0 : index
    %3 = vector.load %arg3[%c0_3, %c0_4] : memref<1x128xf32, #tpu.memory_space<vmem>>, vector<1x128xf32>
    %4 = vector.broadcast %3 : vector<1x128xf32> to vector<16x128xf32>
    %5 = arith.addf %2, %4 : vector<16x128xf32>
    %c0_5 = arith.constant 0 : index
    %c0_6 = arith.constant 0 : index
    %6 = vector.load %arg4[%c0_5, %c0_6] : memref<16x128xf32, #tpu.memory_space<vmem>>, vector<16x128xf32>
    tpu.vector_store %arg4[%c0_5, %c0_6], %5 {strides = array<i32>} : memref<16x128xf32, #tpu.memory_space<vmem>>, vector<16x128xf32>,
    return
  }
  func.func @transform_0(%arg0: i32) -> (i32, i32) {
    %c0_i32 = arith.constant 0 : i32
    %c0_i32_0 = arith.constant 0 : i32
    return %arg0, %c0_i32 : i32, i32
  }
  func.func @transform_1(%arg0: i32) -> (i32, i32) {
    %c0_i32 = arith.constant 0 : i32
    %c0_i32_0 = arith.constant 0 : i32
    %c0_i32_1 = arith.constant 0 : i32
    return %c0_i32, %c0_i32_0 : i32, i32
  }
  func.func @transform_2(%arg0: i32) -> (i32, i32) {
    %c0_i32 = arith.constant 0 : i32
    %c0_i32_0 = arith.constant 0 : i32
    %c0_i32_1 = arith.constant 0 : i32
    return %c0_i32, %c0_i32_0 : i32, i32
  }
  func.func @transform_3(%arg0: i32) -> (i32, i32) {
    %c0_i32 = arith.constant 0 : i32
    %c0_i32_0 = arith.constant 0 : i32
    return %arg0, %c0_i32 : i32, i32
  }
}

</mosaic_0001>

<bundles_post_ra>
// kernel: tpu_custom_call.1
= control target key start
LH: loop header
LB: loop body
LE: loop exit
PB: predicated region body
PF: predicated region fallthrough
CT: control target
= control target key end

     0   :  { %8 = vsyncpa [#allocation3], 0  ;;  %s399_s0 = inlined_call_operand.hbm [shape: f32[16,128], index: 0, kind: input, shape index: {}]   ;;  %s400_s1 = inlined_call_operand.hbm [shape: f32[128,128], index: 1, kind: input, shape index: {}]   ;;  %s401_s2 = inlined_call_operand.vmem [shape: f32[1,128], index: 2, kind: input, shape index: {}]   ;;  %s402_s3 = inlined_call_operand.hbm [shape: f32[16,128], index: 3, kind: output, shape index: {}]  }
   0x1   :  { %9 = vsyncpa [#allocation6], 0 }
   0x2   :  { %10 = vsyncpa [#allocation4], 0  ;;  %s326_s12 = smov [#allocation2]   ;;  %s254_s16 = scalar_lea.hbm %s399_s0, 256 }
   0x3   :  { %s16_s13 = sshll.u32 %s326_s12, 4  ;;  %p255_p0 = scmp.ne.s32.totalorder %s399_s0, %s254_s16  ;;  %s17_s13 = int_to_ptr.vmem [resolvable:$true] %s16_s13 }
   0x4   :  { %p258_p1 = scmp.lt.u32.totalorder %s254_s16, %s399_s0 }
   0x6   :  { %p260_p2 = pnand %p258_p1, %p255_p0 }
   0x8   :  { %263 = shalt.err (!%p260_p2)
}
   0x9   :  { %s264_s21 = scalar_lea.vmem %s17_s13, 256  ;;  %p269_p4 = scmp.lt.s32.totalorder %s17_s13, %s17_s13 }
   0xa   :  { %p265_p3 = scmp.ne.s32.totalorder %s17_s13, %s264_s21  ;;  %p270_p5 = scmp.lt.s32.totalorder %s264_s21, %s264_s21 }
   0xc   :  { %p271_p6 = por %p270_p5, %p269_p4 }
   0xe   :  { %p272_p7 = pnand %p271_p6, %p265_p3 }
  0x10   :  { %275 = shalt.err (!%p272_p7)
}
  0x11   :  { %s327_s22 = smov 128   ;;  %s328_s23 = smov 8  }
  0x12   :  { %22 = dma.hbm_to_vmem [thread:$0]  %s399_s0, 256, %s17_s13, [#allocation3], %s327_s22, %s327_s22, %s328_s23  }
  0x13   :  { %s329_s26 = smov [#allocation5]   ;;  %s276_s30 = scalar_lea.hbm %s400_s1, 2048 }
  0x14   :  { %s28_s27 = sshll.u32 %s329_s26, 4  ;;  %p277_p8 = scmp.ne.s32.totalorder %s400_s1, %s276_s30  ;;  %s29_s27 = int_to_ptr.vmem [resolvable:$true] %s28_s27 }
  0x15   :  { %p280_p9 = scmp.lt.u32.totalorder %s276_s30, %s400_s1 }
  0x17   :  { %p282_p10 = pnand %p280_p9, %p277_p8 }
  0x19   :  { %285 = shalt.err (!%p282_p10)
}
  0x1a   :  { %s286_s8 = scalar_lea.vmem %s29_s27, 2048  ;;  %p291_p12 = scmp.lt.s32.totalorder %s29_s27, %s29_s27 }
  0x1b   :  { %p287_p11 = scmp.ne.s32.totalorder %s29_s27, %s286_s8  ;;  %p292_p13 = scmp.lt.s32.totalorder %s286_s8, %s286_s8 }
  0x1d   :  { %p293_p0 = por %p292_p13, %p291_p12 }
  0x1f   :  { %p294_p1 = pnand %p293_p0, %p287_p11 }
  0x21   :  { %297 = shalt.err (!%p294_p1)
}
  0x22   :  { %34 = dma.hbm_to_vmem [thread:$0]  %s400_s1, 2048, %s29_s27, [#allocation6], %s327_s22, %s327_s22, %s328_s23  }
  0x23   :  { %320 = dma.done.wait [#allocation3], 256  }
  0x24   :  { %321 = vsyncadd [#allocation3], 4294967040 }
  0x25   :  { %322 = dma.done.wait [#allocation6], 2048  }
  0x26   :  { %323 = vsyncadd [#allocation6], 4294965248  ;;  %v45_v0 = vld [vmem:[#allocation5] sm:$0xff]  ;;  %v46_v1 = vld [vmem:[#allocation5 + $0x8] sm:$0xff]  ;;  %s330_s11 = smov [#allocation7]  }
  0x27   :  { %v47_v2 = vld [vmem:[#allocation5 + $0x10] sm:$0xff]  ;;  %v217_v3 = vpack.c.bf16 %v46_v1, %v45_v0  ;;  %v48_v4 = vld [vmem:[#allocation5 + $0x18] sm:$0xff]  ;;  %v49_v6 = vld [vmem:[#allocation5 + $0x20] sm:$0xff]  ;;  %s150_s12 = sshll.u32 %s330_s11, 4  ;;  %s151_s12 = int_to_ptr.vmem [resolvable:$true] %s150_s12 }
  0x28   :  { %v221_v5 = vpack.c.bf16 %v48_v4, %v47_v2  ;;  %v50_v7 = vld [vmem:[#allocation5 + $0x28] sm:$0xff]  ;;  %v43_v9 = vld [vmem:[#allocation2] sm:$0xff]  ;;  %v52_v11 = vld [vmem:[#allocation5 + $0x38] sm:$0xff]  ;;  %s298_s13 = scalar_lea.vmem %s151_s12, 256  ;;  %p303_p3 = scmp.lt.s32.totalorder %s151_s12, %s151_s12 }
  0x29   :  { %218 = vmatprep.subr.bf16.mxu0 %v217_v3  ;;  %v225_v8 = vpack.c.bf16 %v50_v7, %v49_v6  ;;  %v51_v10 = vld [vmem:[#allocation5 + $0x30] sm:$0xff]  ;;  %214 = vmatprep.mubr.f32.mxu0 %v43_v9  ;;  %v53_v13 = vld [vmem:[#allocation5 + $0x40] sm:$0xff]  ;;  %v54_v14 = vld [vmem:[#allocation5 + $0x48] sm:$0xff]  ;;  %p299_p2 = scmp.ne.s32.totalorder %s151_s12, %s298_s13  ;;  %p304_p4 = scmp.lt.s32.totalorder %s298_s13, %s298_s13 }
  0x2a   :  { %220 = vmatpush3.bf16.msra.mxu0 %v217_v3  ;;  %v229_v12 = vpack.c.bf16 %v52_v11, %v51_v10  ;;  %v233_v15 = vpack.c.bf16 %v54_v14, %v53_v13  ;;  %v55_v16 = vld [vmem:[#allocation5 + $0x50] sm:$0xff]  ;;  %v56_v17 = vld [vmem:[#allocation5 + $0x58] sm:$0xff]  ;;  %v57_v19 = vld [vmem:[#allocation5 + $0x60] sm:$0xff] }
  0x2b   :  { %222 = vmatprep.subr.bf16.mxu0 %v221_v5  ;;  %v237_v18 = vpack.c.bf16 %v56_v17, %v55_v16  ;;  %v58_v20 = vld [vmem:[#allocation5 + $0x68] sm:$0xff]  ;;  %v59_v22 = vld [vmem:[#allocation5 + $0x70] sm:$0xff]  ;;  %v60_v23 = vld [vmem:[#allocation5 + $0x78] sm:$0xff]  ;;  %p305_p5 = por %p304_p4, %p303_p3 }
  0x2c   :  { %v241_v21 = vpack.c.bf16 %v58_v20, %v57_v19  ;;  %v245_v24 = vpack.c.bf16 %v60_v23, %v59_v22  ;;  %v44_v25 = vld [vmem:[#allocation2 + $0x8] sm:$0xff]  ;;  %v163_v26 = vld [vmem:[%s401_s2] ss:$0 sm:$0xff] }
  0x2d   :  { %p306_p6 = pnand %p305_p5, %p299_p2 }
  0x2e   :  { %224 = vmatpush3.bf16.msra.mxu0 %v221_v5 }
  0x2f   :  { %226 = vmatprep.subr.bf16.mxu0 %v225_v8 }
  0x32   :  { %228 = vmatpush3.bf16.msra.mxu0 %v225_v8 }
  0x33   :  { %230 = vmatprep.subr.bf16.mxu0 %v229_v12 }
  0x36   :  { %232 = vmatpush3.bf16.msra.mxu0 %v229_v12 }
  0x37   :  { %234 = vmatprep.subr.bf16.mxu0 %v233_v15 }
  0x3a   :  { %236 = vmatpush3.bf16.msra.mxu0 %v233_v15 }
  0x3b   :  { %238 = vmatprep.subr.bf16.mxu0 %v237_v18 }
  0x3e   :  { %240 = vmatpush3.bf16.msra.mxu0 %v237_v18 }
  0x3f   :  { %242 = vmatprep.subr.bf16.mxu0 %v241_v21 }
  0x42   :  { %244 = vmatpush3.bf16.msra.mxu0 %v241_v21 }
  0x43   :  { %246 = vmatprep.subr.bf16.mxu0 %v245_v24 }
  0x46   :  { %248 = vmatpush3.bf16.msra.mxu0 %v245_v24 }
  0x49   :  { %215 = vmatmul.mubr.f32.vlgmr.msra.gmra.mrb[0].mxu0 %v44_v25 }
 0x11c   :  { %v216_v27 = vpop.f32.mrb[0].mxu0 }
 0x11d   :  { %v140_v28 = vadd.f32 %v216_v27, %v163_v26  ;;  %v134_v29 = vpop.f32.mrb[1].mxu0 }
 0x11e   :  { %v135_v30 = vadd.f32 %v163_v26, %v134_v29 }
 0x11f   :  { %144 = vst [vmem:[#allocation7 + $0x8] sm:$0xff] %v140_v28 }
 0x120   :  { %143 = vst [vmem:[#allocation7] sm:$0xff] %v135_v30 }
 0x121   :  { %309 = shalt.err (!%p306_p6)
}
 0x122   :  { %s310_s2 = scalar_lea.hbm %s402_s3, 256 }
 0x123   :  { %p311_p7 = scmp.ne.s32.totalorder %s402_s3, %s310_s2  ;;  %p314_p8 = scmp.lt.u32.totalorder %s310_s2, %s402_s3 }
 0x125   :  { %p316_p9 = pnand %p314_p8, %p311_p7 }
 0x127   :  { %319 = shalt.err (!%p316_p9)
}
 0x128   :  { %156 = dma.vmem_to_hbm [thread:$0]  %s151_s12, 256, %s402_s3, [#allocation4], %s327_s22, %s327_s22, %s328_s23  }
 0x129   :  { %324 = dma.done.wait [#allocation4], 256  }
 0x12a   :  { %325 = vsyncadd [#allocation4], 4294967040 }
 0x12b   :  { %160 = vsyncpa [#allocation3], 1 }
 0x12c   :  { %161 = vsyncpa [#allocation6], 1 }
 0x12d   :  { %162 = vsyncpa [#allocation4], 1 }

</bundles_post_ra>
